<compile_context>
chip_gen: v7x
topology: tpu7x:2x2x1
jax: 0.10.0
libtpu: 0.0.40
codegen_flags: <defaults>
</compile_context>

<pallas_src>
import functools
import math

import jax
import jax.numpy as jnp
from jax import lax
from jax.experimental import pallas as pl
from jax.experimental.pallas import tpu as pltpu

_NEG_INF_SCORE = -1000000000.0          # matches torch masked_fill value
_VMEM_LIMIT = 32 * 1024 * 1024          # raise v5e's 16 MiB scoped default; <= v7x budget


def _pick_tile(dim, desired, align):
    """Largest multiple of `align` that divides `dim` and is <= `desired`.

    Falls back to the full dimension (single block) only if no aligned divisor
    exists (e.g. tiny test shapes), never silently inflating the tile for large
    awkward dims.
    """
    t = min(desired, dim)
    t -= t % align
    while t >= align:
        if dim % t == 0:
            return t
        t -= align
    return dim


# ----------------------------------------------------------------------------
# Linear kernel: tiled (M, K) x (K, N) + bias with f32 VMEM accumulator
# ----------------------------------------------------------------------------
def _linear_kernel(x_ref, w_ref, b_ref, o_ref, acc_ref):
    @pl.when(pl.program_id(2) == 0)
    def _():
        acc_ref[...] = jnp.zeros_like(acc_ref)

    acc_ref[...] += jnp.dot(x_ref[...], w_ref[...],
                            preferred_element_type=jnp.float32)

    @pl.when(pl.program_id(2) == pl.num_programs(2) - 1)
    def _():
        o_ref[...] = (acc_ref[...] + b_ref[...]).astype(o_ref.dtype)


def pallas_linear(x, w, b, *, tm=512, tn=512, tk=512):
    """x: (N, d_in), w: (d_in, d_out), b: (d_out,) f32 -> (N, d_out) in x.dtype."""
    n, d_in = x.shape
    d_out = w.shape[1]
    tm = _pick_tile(n, tm, 8)          # second-minor dims: multiple of 8
    tn = _pick_tile(d_out, tn, 128)    # lane dims: multiple of 128 (MXU / lane-dense)
    tk = _pick_tile(d_in, tk, 128)
    grid = (n // tm, d_out // tn, d_in // tk)
    return pl.pallas_call(
        _linear_kernel,
        out_shape=jax.ShapeDtypeStruct((n, d_out), x.dtype),
        grid=grid,
        in_specs=[
            pl.BlockSpec((tm, tk), lambda i, j, k: (i, k)),
            pl.BlockSpec((tk, tn), lambda i, j, k: (k, j)),
            pl.BlockSpec((1, tn), lambda i, j, k: (0, j)),
        ],
        out_specs=pl.BlockSpec((tm, tn), lambda i, j, k: (i, j)),
        scratch_shapes=[pltpu.VMEM((tm, tn), jnp.float32)],
        compiler_params=pltpu.CompilerParams(
            dimension_semantics=("parallel", "parallel", "arbitrary"),
            vmem_limit_bytes=_VMEM_LIMIT),
    )(x, w, b.reshape(1, d_out).astype(jnp.float32))


# ----------------------------------------------------------------------------
# Flash-style multi-head attention kernel (online softmax over KV tiles)
# ----------------------------------------------------------------------------
def _flash_mha_kernel(q_ref, k_ref, v_ref, *rest, h, d_k, use_mask):
    # q_ref: (tq, d_model) [Q pre-scaled by 1/sqrt(d_k)], k_ref/v_ref: (tkv, d_model),
    # mask_ref (optional): (tq, tkv) int8, o_ref: (tq, d_model) head-major channels.
    if use_mask:
        mask_ref, o_ref, m_sc, l_sc, acc_sc = rest
    else:
        o_ref, m_sc, l_sc, acc_sc = rest

    ki = pl.program_id(2)

    @pl.when(ki == 0)
    def _():
        m_sc[...] = jnp.full_like(m_sc, -jnp.inf)
        l_sc[...] = jnp.zeros_like(l_sc)
        acc_sc[...] = jnp.zeros_like(acc_sc)

    if use_mask:
        # Additive bias computed ONCE per (q_tile, kv_tile) block, shared by all heads.
        bias = jnp.where(mask_ref[...].astype(jnp.float32) == 0.0,
                         jnp.float32(_NEG_INF_SCORE), jnp.float32(0.0))

    for head in range(h):
        lo = head * d_k
        q = q_ref[:, lo:lo + d_k]                 # (tq, d_k), pre-scaled
        k = k_ref[:, lo:lo + d_k]                 # (tkv, d_k)
        v = v_ref[:, lo:lo + d_k]                 # (tkv, d_k)

        # Contract on d_k of both operands -> no explicit K transpose (keeps XLU free).
        s = lax.dot_general(q, k, (((1,), (1,)), ((), ())),
                            preferred_element_type=jnp.float32)  # (tq, tkv)
        if use_mask:
            s = s + bias

        # Online softmax update (f32 running stats per head).
        m_prev = m_sc[head]                                        # (tq, 1)
        m_new = jnp.maximum(m_prev, jnp.max(s, axis=-1, keepdims=True))
        alpha = jnp.exp(m_prev - m_new)
        p = jnp.exp(s - m_new)
        l_sc[head] = alpha * l_sc[head] + jnp.sum(p, axis=-1, keepdims=True)
        acc_sc[head] = alpha * acc_sc[head] + jnp.dot(
            p.astype(v.dtype), v, preferred_element_type=jnp.float32)
        m_sc[head] = m_new

    @pl.when(ki == pl.num_programs(2) - 1)
    def _():
        out = acc_sc[...] * pl.reciprocal(l_sc[...], approx=True)  # (h, tq, d_k)
        # Single lane-dense store in (tq, h*d_k) head-major channel layout.
        o_ref[...] = jnp.concatenate(
            [out[hh] for hh in range(h)], axis=-1).astype(o_ref.dtype)


def pallas_flash_attention(q, k, v, mask, h, *, tq=256, tkv=256):
    """q: (B, Sq, d_model) pre-scaled, k/v: (B, Sk, d_model), mask: (B, Sq, Sk) int8 or None."""
    B, Sq, d_model = q.shape
    Sk = k.shape[1]
    d_k = d_model // h
    tq = _pick_tile(Sq, tq, 8)
    # mask block's last dim is tkv -> needs a multiple of 128 (or full Sk).
    tkv = _pick_tile(Sk, tkv, 128 if mask is not None else 8)
    grid = (B, Sq // tq, Sk // tkv)

    kernel = functools.partial(_flash_mha_kernel, h=h, d_k=d_k,
                               use_mask=mask is not None)

    in_specs = [
        pl.BlockSpec((None, tq, d_model), lambda b, qi, ki: (b, qi, 0)),
        pl.BlockSpec((None, tkv, d_model), lambda b, qi, ki: (b, ki, 0)),
        pl.BlockSpec((None, tkv, d_model), lambda b, qi, ki: (b, ki, 0)),
    ]
    inputs = [q, k, v]
    if mask is not None:
        in_specs.append(
            pl.BlockSpec((None, tq, tkv), lambda b, qi, ki: (b, qi, ki)))
        inputs.append(mask)

    return pl.pallas_call(
        kernel,
        out_shape=jax.ShapeDtypeStruct((B, Sq, d_model), q.dtype),
        grid=grid,
        in_specs=in_specs,
        out_specs=pl.BlockSpec((None, tq, d_model), lambda b, qi, ki: (b, qi, 0)),
        scratch_shapes=[
            pltpu.VMEM((h, tq, 1), jnp.float32),    # running max
            pltpu.VMEM((h, tq, 1), jnp.float32),    # running denom
            pltpu.VMEM((h, tq, d_k), jnp.float32),  # output accumulator
        ],
        compiler_params=pltpu.CompilerParams(
            dimension_semantics=("parallel", "parallel", "arbitrary"),
            vmem_limit_bytes=_VMEM_LIMIT),
    )(*inputs)


# ----------------------------------------------------------------------------
# Parameters & forward
# ----------------------------------------------------------------------------
def init_params(key, h, d_model):
    """Deterministic PyTorch-style nn.Linear init for the 4 projection layers."""
    bound = 1.0 / math.sqrt(d_model)
    params = {}
    names = ("q", "k", "v", "o")
    keys = jax.random.split(key, 2 * len(names))
    for i, n in enumerate(names):
        # stored transposed: (d_in, d_out)
        params["w" + n] = jax.random.uniform(
            keys[2 * i], (d_model, d_model), jnp.float32, -bound, bound)
        params["b" + n] = jax.random.uniform(
            keys[2 * i + 1], (d_model,), jnp.float32, -bound, bound)
    return params


def prepare_params(params, h, compute_dtype=jnp.float32):
    """One-time parameter prep (outside the per-step forward): fold 1/sqrt(d_k)
    into the Q projection and cast weights to the compute dtype (biases stay f32)."""
    d_model = params["wq"].shape[0]
    d_k = d_model // h
    scale = 1.0 / math.sqrt(d_k)
    cd = compute_dtype
    return {
        "wq": (params["wq"] * scale).astype(cd),
        "bq": (params["bq"] * scale).astype(jnp.float32),
        "wk": params["wk"].astype(cd), "bk": params["bk"].astype(jnp.float32),
        "wv": params["wv"].astype(cd), "bv": params["bv"].astype(jnp.float32),
        "wo": params["wo"].astype(cd), "bo": params["bo"].astype(jnp.float32),
    }


def multi_headed_attention(prepared, h, query, key, value, mask=None,
                           *, q_tile=256, kv_tile=256):
    """Forward matching MultiHeadedAttention.forward (dropout = eval-mode identity)."""
    B, Sq, d_model = query.shape
    Sk = key.shape[1]
    cd = prepared["wq"].dtype

    xq = query.astype(cd).reshape(B * Sq, d_model)
    xk = key.astype(cd).reshape(B * Sk, d_model)
    xv = value.astype(cd).reshape(B * Sk, d_model)

    # Q/K/V projections (Q pre-scaled by 1/sqrt(d_k) via the prepared weights).
    q = pallas_linear(xq, prepared["wq"], prepared["bq"]).reshape(B, Sq, d_model)
    k = pallas_linear(xk, prepared["wk"], prepared["bk"]).reshape(B, Sk, d_model)
    v = pallas_linear(xv, prepared["wv"], prepared["bv"]).reshape(B, Sk, d_model)

    if mask is not None:
        # matches torch's mask.unsqueeze(1): same mask for every head.  int8 -> 4x
        # less HBM traffic than an f32 mask.
        mask = jnp.broadcast_to(mask.astype(jnp.int8), (B, Sq, Sk))

    # Flash attention output comes back already in (B, Sq, h*d_k) layout.
    attn_out = pallas_flash_attention(q, k, v, mask, h, tq=q_tile, tkv=kv_tile)

    out = pallas_linear(attn_out.reshape(B * Sq, d_model),
                        prepared["wo"], prepared["bo"])
    return out.reshape(B, Sq, d_model)


# ----------------------------------------------------------------------------
# Reference (pure JAX) for sanity checking
# ----------------------------------------------------------------------------
def reference_mha(params, h, query, key, value, mask=None):
    B, Sq, d_model = query.shape
    Sk = key.shape[1]
    d_k = d_model // h

    def project(x, w, b, S):
        return (x.reshape(B * S, d_model) @ w + b).reshape(B, S, h, d_k).transpose(0, 2, 1, 3)

    q = project(query, params["wq"], params["bq"], Sq)
    k = project(key, params["wk"], params["bk"], Sk)
    v = project(value, params["wv"], params["bv"], Sk)
    scores = jnp.einsum("bhqd,bhkd->bhqk", q, k) / math.sqrt(d_k)
    if mask is not None:
        scores = jnp.where(mask[:, None, :, :] == 0, _NEG_INF_SCORE, scores)
    p = jax.nn.softmax(scores, axis=-1)
    x = jnp.einsum("bhqk,bhkd->bhqd", p, v)
    x = x.transpose(0, 2, 1, 3).reshape(B * Sq, d_model)
    return (x @ params["wo"] + params["bo"]).reshape(B, Sq, d_model)


# ----------------------------------------------------------------------------
if __name__ == "__main__":
    B, S, d_model, h = 2, 8, 32, 4

    root = jax.random.PRNGKey(0)
    k_par, k_x, k_k, k_v = jax.random.split(root, 4)
    params = init_params(k_par, h, d_model)
    prepared_f32 = prepare_params(params, h, jnp.float32)
    prepared_bf16 = prepare_params(params, h, jnp.bfloat16)

    x = jax.random.normal(k_x, (B, S, d_model), jnp.float32)
    key_in = jax.random.normal(k_k, (B, S, d_model), jnp.float32)
    val_in = jax.random.normal(k_v, (B, S, d_model), jnp.float32)

    # causal mask, broadcast over heads (matches mask.unsqueeze(1) semantics)
    mask = jnp.tril(jnp.ones((S, S), jnp.float32))[None, :, :].repeat(B, axis=0)

    # 1) self-attention, f32 compute
    out = jax.block_until_ready(
        multi_headed_attention(prepared_f32, h, x, x, x, mask))
    ref = reference_mha(params, h, x, x, x, mask)
    assert jnp.allclose(out, ref, atol=5e-3, rtol=5e-3), "self-attn f32 mismatch"

    # 2) cross-attention (distinct q/k/v inputs), f32 compute
    out_x = jax.block_until_ready(
        multi_headed_attention(prepared_f32, h, x, key_in, val_in, mask))
    ref_x = reference_mha(params, h, x, key_in, val_in, mask)
    assert jnp.allclose(out_x, ref_x, atol=5e-3, rtol=5e-3), "cross-attn f32 mismatch"

    # 3) mask=None path
    out_nm = jax.block_until_ready(
        multi_headed_attention(prepared_f32, h, x, x, x, None))
    ref_nm = reference_mha(params, h, x, x, x, None)
    assert jnp.allclose(out_nm, ref_nm, atol=5e-3, rtol=5e-3), "no-mask mismatch"

    # 4) bf16 MXU operands (f32 accumulation / f32 softmax), looser tolerance
    out_bf = jax.block_until_ready(
        multi_headed_attention(prepared_bf16, h, x, x, x, mask))
    assert jnp.allclose(out_bf.astype(jnp.float32), ref, atol=8e-2, rtol=8e-2), \
        "bf16 mismatch"

    # 5) larger shape exercising the multi-tile flash path (multiple q and KV tiles)
    B2, S2, d_model2, h2 = 1, 256, 128, 2
    params2 = init_params(jax.random.PRNGKey(1), h2, d_model2)
    prepared2 = prepare_params(params2, h2, jnp.float32)
    x2 = jax.random.normal(jax.random.PRNGKey(2), (B2, S2, d_model2), jnp.float32)
    mask2 = jnp.tril(jnp.ones((S2, S2), jnp.float32))[None, :, :]
    out2 = jax.block_until_ready(
        multi_headed_attention(prepared2, h2, x2, x2, x2, mask2,
                               q_tile=64, kv_tile=128))
    ref2 = reference_mha(params2, h2, x2, x2, x2, mask2)
    assert jnp.allclose(out2, ref2, atol=5e-3, rtol=5e-3), "tiled flash mismatch"

    print("KERNEL_OK")
</pallas_src>

<mosaic_0001>
module attributes {stable_mosaic.version = 11 : i64} {
  func.func @_linear_kernel(%arg0: i32, %arg1: i32, %arg2: i32, %arg3: memref<16x32xf32, #tpu.memory_space<vmem>>, %arg4: memref<32x32xf32, #tpu.memory_space<vmem>>, %arg5: memref<1x32xf32, #tpu.memory_space<vmem>>, %arg6: memref<16x32xf32, #tpu.memory_space<vmem>>, %arg7: memref<16x32xf32, #tpu.memory_space<vmem>>) attributes {dimension_semantics = [#tpu.dimension_semantics<parallel>, #tpu.dimension_semantics<parallel>, #tpu.dimension_semantics<arbitrary>], iteration_bounds = array<i64: 1, 1, 1>, scalar_prefetch = 0 : i64, scratch_operands = 1 : i64, tpu.core_type = #tpu.core_type<tc>, window_params = [{transform_indices = @transform_0, window_bounds = array<i64: 16, 32>}, {transform_indices = @transform_1, window_bounds = array<i64: 32, 32>}, {transform_indices = @transform_2, window_bounds = array<i64: 1, 32>}, {transform_indices = @transform_3, window_bounds = array<i64: 16, 32>}]} {
    %c0_i32 = arith.constant 0 : i32
    %0 = arith.cmpi eq, %arg2, %c0_i32 : i32
    %1 = arith.extui %0 : i1 to i32
    %c0_i32_0 = arith.constant 0 : i32
    %2 = arith.cmpi ne, %1, %c0_i32_0 : i32
    scf.if %2 {
      %cst_10 = arith.constant 0.000000e+00 : f32
      %12 = vector.broadcast %cst_10 : f32 to vector<16x32xf32>
      %c0_11 = arith.constant 0 : index
      %c0_12 = arith.constant 0 : index
      %13 = vector.load %arg7[%c0_11, %c0_12] : memref<16x32xf32, #tpu.memory_space<vmem>>, vector<16x32xf32>
      tpu.vector_store %arg7[%c0_11, %c0_12], %12 {strides = array<i32>} : memref<16x32xf32, #tpu.memory_space<vmem>>, vector<16x32xf32>,
    } else {
    }
    %c0 = arith.constant 0 : index
    %c0_1 = arith.constant 0 : index
    %3 = vector.load %arg7[%c0, %c0_1] : memref<16x32xf32, #tpu.memory_space<vmem>>, vector<16x32xf32>
    %c0_2 = arith.constant 0 : index
    %c0_3 = arith.constant 0 : index
    %4 = vector.load %arg3[%c0_2, %c0_3] : memref<16x32xf32, #tpu.memory_space<vmem>>, vector<16x32xf32>
    %c0_4 = arith.constant 0 : index
    %c0_5 = arith.constant 0 : index
    %5 = vector.load %arg4[%c0_4, %c0_5] : memref<32x32xf32, #tpu.memory_space<vmem>>, vector<32x32xf32>
    %cst = arith.constant dense<0.000000e+00> : vector<16x32xf32>
    %6 = tpu.matmul %4, %5, %cst {dimension_numbers = #tpu.dot_dimension_numbers<[1], [0], [0], [1], [0, 0, 1, 1], [], []>} : vector<16x32xf32>, vector<32x32xf32>, vector<16x32xf32> -> vector<16x32xf32>
    %7 = arith.addf %3, %6 : vector<16x32xf32>
    %c0_6 = arith.constant 0 : index
    %c0_7 = arith.constant 0 : index
    %8 = vector.load %arg7[%c0_6, %c0_7] : memref<16x32xf32, #tpu.memory_space<vmem>>, vector<16x32xf32>
    tpu.vector_store %arg7[%c0_6, %c0_7], %7 {strides = array<i32>} : memref<16x32xf32, #tpu.memory_space<vmem>>, vector<16x32xf32>,
    %c0_i32_8 = arith.constant 0 : i32
    %9 = arith.cmpi eq, %arg2, %c0_i32_8 : i32
    %10 = arith.extui %9 : i1 to i32
    %c0_i32_9 = arith.constant 0 : i32
    %11 = arith.cmpi ne, %10, %c0_i32_9 : i32
    scf.if %11 {
      %c0_10 = arith.constant 0 : index
      %c0_11 = arith.constant 0 : index
      %12 = vector.load %arg7[%c0_10, %c0_11] : memref<16x32xf32, #tpu.memory_space<vmem>>, vector<16x32xf32>
      %c0_12 = arith.constant 0 : index
      %c0_13 = arith.constant 0 : index
      %13 = vector.load %arg5[%c0_12, %c0_13] : memref<1x32xf32, #tpu.memory_space<vmem>>, vector<1x32xf32>
      %14 = vector.broadcast %13 : vector<1x32xf32> to vector<16x32xf32>
      %15 = arith.addf %12, %14 : vector<16x32xf32>
      %c0_14 = arith.constant 0 : index
      %c0_15 = arith.constant 0 : index
      %16 = vector.load %arg6[%c0_14, %c0_15] : memref<16x32xf32, #tpu.memory_space<vmem>>, vector<16x32xf32>
      tpu.vector_store %arg6[%c0_14, %c0_15], %15 {strides = array<i32>} : memref<16x32xf32, #tpu.memory_space<vmem>>, vector<16x32xf32>,
    } else {
    }
    return
  }
  func.func @transform_0(%arg0: i32, %arg1: i32, %arg2: i32) -> (i32, i32) {
    %c0_i32 = arith.constant 0 : i32
    return %arg0, %arg2 : i32, i32
  }
  func.func @transform_1(%arg0: i32, %arg1: i32, %arg2: i32) -> (i32, i32) {
    %c0_i32 = arith.constant 0 : i32
    return %arg2, %arg1 : i32, i32
  }
  func.func @transform_2(%arg0: i32, %arg1: i32, %arg2: i32) -> (i32, i32) {
    %c0_i32 = arith.constant 0 : i32
    %c0_i32_0 = arith.constant 0 : i32
    return %c0_i32, %arg1 : i32, i32
  }
  func.func @transform_3(%arg0: i32, %arg1: i32, %arg2: i32) -> (i32, i32) {
    %c0_i32 = arith.constant 0 : i32
    return %arg0, %arg1 : i32, i32
  }
}

</mosaic_0001>

<bundles_post_ra>
// kernel: tpu_custom_call.1
= control target key start
LH: loop header
LB: loop body
LE: loop exit
PB: predicated region body
PF: predicated region fallthrough
CT: control target
= control target key end

     0   :  { %8 = vsyncpa [#allocation4], 0  ;;  %s366_s0 = inlined_call_operand.hbm [shape: f32[16,32], index: 0, kind: input, shape index: {}]   ;;  %s367_s1 = inlined_call_operand.hbm [shape: f32[32,32], index: 1, kind: input, shape index: {}]   ;;  %s368_s2 = inlined_call_operand.vmem [shape: f32[1,32], index: 2, kind: input, shape index: {}]   ;;  %s369_s3 = inlined_call_operand.hbm [shape: f32[16,32], index: 3, kind: output, shape index: {}]  }
   0x1   :  { %9 = vsyncpa [#allocation7], 0 }
   0x2   :  { %10 = vsyncpa [#allocation5], 0  ;;  %s284_s12 = smov [#allocation3]   ;;  %s212_s16 = scalar_lea.hbm %s366_s0, 256 }
   0x3   :  { %s16_s13 = sshll.u32 %s284_s12, 4  ;;  %p213_p0 = scmp.ne.s32.totalorder %s366_s0, %s212_s16  ;;  %s17_s13 = int_to_ptr.vmem [resolvable:$true] %s16_s13 }
   0x4   :  { %p216_p1 = scmp.lt.u32.totalorder %s212_s16, %s366_s0 }
   0x6   :  { %p218_p2 = pnand %p216_p1, %p213_p0 }
   0x8   :  { %221 = shalt.err (!%p218_p2)
}
   0x9   :  { %s222_s21 = scalar_lea.vmem %s17_s13, 256  ;;  %p227_p4 = scmp.lt.s32.totalorder %s17_s13, %s17_s13 }
   0xa   :  { %p223_p3 = scmp.ne.s32.totalorder %s17_s13, %s222_s21  ;;  %p228_p5 = scmp.lt.s32.totalorder %s222_s21, %s222_s21 }
   0xc   :  { %p229_p6 = por %p228_p5, %p227_p4 }
   0xe   :  { %p230_p7 = pnand %p229_p6, %p223_p3 }
  0x10   :  { %233 = shalt.err (!%p230_p7)
}
  0x11   :  { %s285_s22 = smov 128   ;;  %s286_s23 = smov 8  }
  0x12   :  { %22 = dma.hbm_to_vmem [thread:$0]  %s366_s0, 256, %s17_s13, [#allocation4], %s285_s22, %s285_s22, %s286_s23  }
  0x13   :  { %s287_s26 = smov [#allocation6]   ;;  %s234_s30 = scalar_lea.hbm %s367_s1, 512 }
  0x14   :  { %s28_s27 = sshll.u32 %s287_s26, 4  ;;  %p235_p8 = scmp.ne.s32.totalorder %s367_s1, %s234_s30  ;;  %s29_s27 = int_to_ptr.vmem [resolvable:$true] %s28_s27 }
  0x15   :  { %p238_p9 = scmp.lt.u32.totalorder %s234_s30, %s367_s1 }
  0x17   :  { %p240_p10 = pnand %p238_p9, %p235_p8 }
  0x19   :  { %243 = shalt.err (!%p240_p10)
}
  0x1a   :  { %s244_s8 = scalar_lea.vmem %s29_s27, 512  ;;  %p249_p12 = scmp.lt.s32.totalorder %s29_s27, %s29_s27 }
  0x1b   :  { %p245_p11 = scmp.ne.s32.totalorder %s29_s27, %s244_s8  ;;  %p250_p13 = scmp.lt.s32.totalorder %s244_s8, %s244_s8 }
  0x1d   :  { %p251_p0 = por %p250_p13, %p249_p12 }
  0x1f   :  { %p252_p1 = pnand %p251_p0, %p245_p11 }
  0x21   :  { %255 = shalt.err (!%p252_p1)
}
  0x22   :  { %34 = dma.hbm_to_vmem [thread:$0]  %s367_s1, 512, %s29_s27, [#allocation7], %s285_s22, %s285_s22, %s286_s23  }
  0x23   :  { %278 = dma.done.wait [#allocation4], 256  }
  0x24   :  { %279 = vsyncadd [#allocation4], 4294967040 }
  0x25   :  { %280 = dma.done.wait [#allocation7], 512  }
  0x26   :  { %281 = vsyncadd [#allocation7], 4294966784  ;;  %vm47_vm0 = vcmask 261120   ;;  %v288_v0 = vmov 0.0   ;;  %v54_v1 = vld [vmem:[#allocation6] sm:$0xff]  ;;  %v55_v2 = vld [vmem:[#allocation6 + $0x8] sm:$0xff] }
  0x27   :  { %49 = vst.msk [vmem:[#allocation2 + $0x8] sm:$0xff] %vm47_vm0, %v288_v0  ;;  %48 = vst.msk [vmem:[#allocation2] sm:$0xff] %vm47_vm0, %v288_v0  ;;  %v56_v3 = vld [vmem:[#allocation6 + $0x10] sm:$0xff]  ;;  %v198_v4 = vpack.c.bf16 %v55_v2, %v54_v1  ;;  %v57_v5 = vld [vmem:[#allocation6 + $0x18] sm:$0xff]  ;;  %s289_s11 = smov [#allocation8]  }
  0x28   :  { %v52_v6 = vld [vmem:[#allocation3] sm:$0xff]  ;;  %v202_v7 = vpack.c.bf16 %v57_v5, %v56_v3  ;;  %v53_v8 = vld [vmem:[#allocation3 + $0x8] sm:$0xff]  ;;  %v180_v15 = vld [vmem:[%s368_s2] ss:$0 sm:$0xff]  ;;  %s165_s12 = sshll.u32 %s289_s11, 4  ;;  %s166_s12 = int_to_ptr.vmem [resolvable:$true] %s165_s12 }
  0x29   :  { %195 = vmatprep.mubr.msk.f32.mxu0 %vm47_vm0, %v52_v6  ;;  %199 = vmatprep.subr.bf16.mxu0 %v198_v4  ;;  %s256_s13 = scalar_lea.vmem %s166_s12, 256  ;;  %p261_p3 = scmp.lt.s32.totalorder %s166_s12, %s166_s12 }
  0x2a   :  { %201 = vmatpush3.bf16.msra.mxu0 %v198_v4  ;;  %p257_p2 = scmp.ne.s32.totalorder %s166_s12, %s256_s13  ;;  %p262_p4 = scmp.lt.s32.totalorder %s256_s13, %s256_s13 }
  0x2b   :  { %203 = vmatprep.subr.bf16.mxu0 %v202_v7 }
  0x2c   :  { %p263_p5 = por %p262_p4, %p261_p3 }
  0x2e   :  { %205 = vmatpush3.bf16.msra.mxu0 %v202_v7  ;;  %v51_v9 = vld [vmem:[#allocation2 + $0x8] sm:$0xff]  ;;  %v50_v10 = vld [vmem:[#allocation2] sm:$0xff]  ;;  %p264_p6 = pnand %p263_p5, %p257_p2 }
  0x31   :  { %196 = vmatmul.mubr.msk.f32.vlgmr.msra.gmra.mrb[0].mxu0 %vm47_vm0, %v53_v8 }
 0x104   :  { %v197_v11 = vpop.f32.mrb[0].mxu0 }
 0x105   :  { %v141_v12 = vadd.f32 %v197_v11, %v51_v9  ;;  %v131_v13 = vpop.f32.mrb[1].mxu0 }
 0x106   :  { %v140_v14 = vadd.f32 %v131_v13, %v50_v10 }
 0x107   :  { %143 = vst.msk [vmem:[#allocation2 + $0x8] sm:$0xff] %vm47_vm0, %v141_v12 }
 0x108   :  { %142 = vst.msk [vmem:[#allocation2] sm:$0xff] %vm47_vm0, %v140_v14 }
 0x10e   :  { %v148_v16 = vld [vmem:[#allocation2 + $0x8] sm:$0xff] }
 0x10f   :  { %v147_v17 = vld [vmem:[#allocation2] sm:$0xff]  ;;  %v157_v18 = vadd.f32 %v180_v15, %v148_v16 }
 0x110   :  { %v156_v19 = vadd.f32 %v180_v15, %v147_v17 }
 0x111   :  { %159 = vst.msk [vmem:[#allocation8 + $0x8] sm:$0xff] %vm47_vm0, %v157_v18 }
 0x112   :  { %158 = vst.msk [vmem:[#allocation8] sm:$0xff] %vm47_vm0, %v156_v19 }
 0x113   :  { %267 = shalt.err (!%p264_p6)
}
 0x114   :  { %s268_s15 = scalar_lea.hbm %s369_s3, 256 }
 0x115   :  { %p269_p7 = scmp.ne.s32.totalorder %s369_s3, %s268_s15  ;;  %p272_p8 = scmp.lt.u32.totalorder %s268_s15, %s369_s3 }
 0x117   :  { %p274_p9 = pnand %p272_p8, %p269_p7 }
 0x119   :  { %277 = shalt.err (!%p274_p9)
}
 0x11a   :  { %171 = dma.vmem_to_hbm [thread:$0]  %s166_s12, 256, %s369_s3, [#allocation5], %s285_s22, %s285_s22, %s286_s23  }
 0x11b   :  { %282 = dma.done.wait [#allocation5], 256  }
 0x11c   :  { %283 = vsyncadd [#allocation5], 4294967040 }
 0x11d   :  { %175 = vsyncpa [#allocation4], 1 }
 0x11e   :  { %176 = vsyncpa [#allocation7], 1 }
 0x11f   :  { %177 = vsyncpa [#allocation5], 1 }

</bundles_post_ra>
